<compile_context>
chip_gen: v5e
topology: v5e:2x2
jax: 0.10.0
libtpu: 0.0.40
codegen_flags: <defaults>
</compile_context>

<pallas_src>
import math

import jax
import jax.numpy as jnp
from jax.experimental import pallas as pl
from jax.experimental.pallas import tpu as pltpu


def _pe_kernel(tab_ref, o_ref):
    """tab_ref: (1, col_tile) f32 table tile.  o_ref: (b_tile, col_tile) output block.

    Pure fan-out: every batch row of this block is a copy of the table tile.
    Static unrolled per-row stores avoid materializing a (b_tile, col_tile) broadcast.
    """
    for b in range(o_ref.shape[0]):
        o_ref[pl.ds(b, 1), :] = tab_ref[...]


# Tiling budgets (bytes).  Double-buffered by the BlockSpec pipeline, so peak VMEM is
# roughly 2*blk + 2*col + slack, which stays well under the 32 MiB limit we request.
_COL_BUDGET_BYTES = 1 * 1024 * 1024    # per table (column) tile
_BLK_BUDGET_BYTES = 8 * 1024 * 1024    # per output block (b_tile x col_tile)
_MAX_UNROLL_ROWS = 64                  # bound on the static per-row store unroll


def _pick_col_tile(flat_cols):
    """Largest 128-multiple divisor of flat_cols within the column budget,
    or the full row if it already fits / no such divisor exists."""
    if flat_cols * 4 <= _COL_BUDGET_BYTES:
        return flat_cols
    cap = _COL_BUDGET_BYTES // 4
    best = None
    d = 128
    limit = min(flat_cols, cap)
    while d <= limit:
        if flat_cols % d == 0:
            best = d
        d += 128
    # Fallback: the full row is always layout-legal; may exceed the soft budget for
    # extreme shapes, but typical seq*emb always has a 128-multiple divisor in budget.
    return best if best is not None else flat_cols


def _pick_b_tile(bs, col_bytes):
    """Divisor of bs that is layout-legal as the second-to-last block dim
    (multiple of 8, or the full batch), preferring the fattest block in budget."""
    cands = [d for d in range(1, bs + 1) if bs % d == 0 and (d == bs or d % 8 == 0)]
    fitting = [d for d in cands
               if d * col_bytes <= _BLK_BUDGET_BYTES and d <= _MAX_UNROLL_ROWS]
    if fitting:
        return max(fitting)
    return min(cands)  # smallest legal tile; still correct for awkward batch sizes


def positional_embedding(x, embedding_size, max_len=512):
    """Pallas equivalent of PositionalEmbedding.forward.

    Args:
      x: array of shape [batch, seq_len, ...] (only shape[0], shape[1] are used).
      embedding_size: hidden size of the positional embedding.
      max_len: maximum sequence length supported (parity with the module).
    Returns:
      float32 array [batch, seq_len, embedding_size].
    """
    bs, seq_len = int(x.shape[0]), int(x.shape[1])
    assert seq_len <= max_len, "seq_len exceeds max_len"

    # Exact BERT sinusoidal table, built once outside the kernel (mirrors the torch
    # buffer construction; exact cos for odd features -- no phase-shift shortcut).
    position = jnp.arange(seq_len, dtype=jnp.float32)[:, None]
    div_term = jnp.exp(jnp.arange(0, embedding_size, 2, dtype=jnp.float32)
                       * -(math.log(10000.0) / embedding_size))
    angles = position * div_term                                   # (seq, emb//2)
    pe = jnp.zeros((seq_len, embedding_size), jnp.float32)
    pe = pe.at[:, 0::2].set(jnp.sin(angles))
    pe = pe.at[:, 1::2].set(jnp.cos(angles))

    flat_cols = seq_len * embedding_size
    tab = pe.reshape(1, flat_cols)                                 # lane-dense row

    col_tile = _pick_col_tile(flat_cols)
    b_tile = _pick_b_tile(bs, col_tile * 4)
    grid = (flat_cols // col_tile, bs // b_tile)                   # batch axis innermost

    out2d = pl.pallas_call(
        _pe_kernel,
        out_shape=jax.ShapeDtypeStruct((bs, flat_cols), jnp.float32),
        grid=grid,
        # Table block index is constant across the (inner) batch axis -> fetched once
        # per column tile by the pipeline.
        in_specs=[pl.BlockSpec((1, col_tile), lambda c, b: (0, c))],
        out_specs=pl.BlockSpec((b_tile, col_tile), lambda c, b: (b, c)),
        compiler_params=pltpu.CompilerParams(
            # No carried state -> both axes independent; megacore/v7x can shard
            # whichever axis has extent > 1.
            dimension_semantics=("parallel", "parallel"),
            vmem_limit_bytes=32 * 1024 * 1024,
        ),
        cost_estimate=pl.CostEstimate(
            flops=0,
            transcendentals=0,
            bytes_accessed=(bs + 1) * flat_cols * 4,
        ),
    )(tab)

    return out2d.reshape(bs, seq_len, embedding_size)


def _reference_pe(bs, seq_len, embedding_size):
    # Pure-JAX reference mirroring the torch __init__ buffer construction.
    position = jnp.arange(0, seq_len, dtype=jnp.float32)[:, None]
    div_term = jnp.exp(
        jnp.arange(0, embedding_size, 2, dtype=jnp.float32)
        * -(math.log(10000.0) / embedding_size)
    )
    pe = jnp.zeros((seq_len, embedding_size), jnp.float32)
    pe = pe.at[:, 0::2].set(jnp.sin(position * div_term))
    pe = pe.at[:, 1::2].set(jnp.cos(position * div_term))
    return jnp.broadcast_to(pe[None], (bs, seq_len, embedding_size))


if __name__ == "__main__":
    key = jax.random.PRNGKey(0)
    bs, seq_len, hidden = 2, 8, 32
    # x is a "sequence of tokens"; only its leading two dims matter.
    x = jax.random.normal(key, (bs, seq_len, hidden), dtype=jnp.float32)

    out = positional_embedding(x, embedding_size=hidden, max_len=512)
    out = jax.block_until_ready(out)

    ref = _reference_pe(bs, seq_len, hidden)
    assert out.shape == (bs, seq_len, hidden)
    assert jnp.allclose(out, ref, atol=1e-6, rtol=1e-6), "mismatch vs reference"

    print("KERNEL_OK")
</pallas_src>

<mosaic_0001>
module attributes {stable_mosaic.version = 11 : i64} {
  func.func @_pe_kernel(%arg0: i32, %arg1: i32, %arg2: memref<1x256xf32, #tpu.memory_space<vmem>>, %arg3: memref<2x256xf32, #tpu.memory_space<vmem>>) attributes {dimension_semantics = [#tpu.dimension_semantics<parallel>, #tpu.dimension_semantics<parallel>], iteration_bounds = array<i64: 1, 1>, scalar_prefetch = 0 : i64, scratch_operands = 0 : i64, tpu.core_type = #tpu.core_type<tc>, window_params = [{transform_indices = @transform_0, window_bounds = array<i64: 1, 256>}, {transform_indices = @transform_1, window_bounds = array<i64: 2, 256>}]} {
    %c0 = arith.constant 0 : index
    %c0_0 = arith.constant 0 : index
    %0 = vector.load %arg2[%c0, %c0_0] : memref<1x256xf32, #tpu.memory_space<vmem>>, vector<1x256xf32>
    %c0_1 = arith.constant 0 : index
    %c0_2 = arith.constant 0 : index
    %1 = vector.load %arg3[%c0_1, %c0_2] : memref<2x256xf32, #tpu.memory_space<vmem>>, vector<1x256xf32>
    tpu.vector_store %arg3[%c0_1, %c0_2], %0 {strides = array<i32>} : memref<2x256xf32, #tpu.memory_space<vmem>>, vector<1x256xf32>,
    %c0_3 = arith.constant 0 : index
    %c0_4 = arith.constant 0 : index
    %2 = vector.load %arg2[%c0_3, %c0_4] : memref<1x256xf32, #tpu.memory_space<vmem>>, vector<1x256xf32>
    %c1 = arith.constant 1 : index
    %c0_5 = arith.constant 0 : index
    %3 = vector.load %arg3[%c1, %c0_5] : memref<2x256xf32, #tpu.memory_space<vmem>>, vector<1x256xf32>
    tpu.vector_store %arg3[%c1, %c0_5], %2 {strides = array<i32>} : memref<2x256xf32, #tpu.memory_space<vmem>>, vector<1x256xf32>,
    return
  }
  func.func @transform_0(%arg0: i32, %arg1: i32) -> (i32, i32) {
    %c0_i32 = arith.constant 0 : i32
    %c0_i32_0 = arith.constant 0 : i32
    return %c0_i32, %arg0 : i32, i32
  }
  func.func @transform_1(%arg0: i32, %arg1: i32) -> (i32, i32) {
    %c0_i32 = arith.constant 0 : i32
    return %arg1, %arg0 : i32, i32
  }
}

</mosaic_0001>

<bundles_post_ra>
// kernel: tpu_custom_call.1
= control target key start
LH: loop header
LB: loop body
LE: loop exit
PB: predicated region body
PF: predicated region fallthrough
CT: control target
= control target key end

     0   :  { %6 = vsyncpa [#allocation3], 0  ;;  %s121_s0 = inlined_call_operand.hbm [shape: f32[1,256], index: 0, kind: input, shape index: {}]   ;;  %s122_s1 = inlined_call_operand.hbm [shape: f32[2,256], index: 1, kind: output, shape index: {}]  }
   0x1   :  { %7 = vsyncpa [#allocation4], 0  ;;  %s13_s8 = sshll.u32 %s121_s0, 4  ;;  %s103_s9 = smov [#allocation2]   ;;  %s14_s8 = int_to_ptr.hbm [resolvable:$true] %s13_s8 }
   0x2   :  { %s15_s10 = sshll.u32 %s103_s9, 4  ;;  %s16_s10 = int_to_ptr.vmem [resolvable:$true] %s15_s10 }
   0x3   :  { %18 = dma.hbm_to_vmem [thread:$0]  %s14_s8, 32, %s16_s10, [#allocation3]  }
   0x4   :  { %99 = dma.done.wait [#allocation3], 32  }
   0x5   :  { %100 = vsyncadd [#allocation3], 4294967264  ;;  %v24_v0 = vlaneseq  ;;  %s104_s11 = smov [#allocation5]   ;;  %s39_s15 = sshll.u32 %s122_s1, 4  ;;  %v23_v1 = vld [vmem:[#allocation2] sm:$0x3]  ;;  %s40_s15 = int_to_ptr.hbm [resolvable:$true] %s39_s15 }
   0x6   :  { %s37_s12 = sshll.u32 %s104_s11, 4  ;;  %v29_v2 = vld [vmem:[#allocation2] sm:$0x3]  ;;  %s38_s12 = int_to_ptr.vmem [resolvable:$true] %s37_s12 }
   0x7   :  { %vm26_vm0 = vcmp.lt.s32.totalorder %v24_v0, 256 }
   0x8   :  { %28 = vst.msk [vmem:[#allocation5] ss:$2 sm:$0x3] %vm26_vm0, %v23_v1 }
   0x9   :  { %31 = vst.msk [vmem:[#allocation5 + $0x1] ss:$2 sm:$0x3] %vm26_vm0, %v29_v2 }
   0xa   :  { %42 = dma.vmem_to_hbm [thread:$0]  %s38_s12, 64, %s40_s15, [#allocation4]  }
   0xb   :  { %101 = dma.done.wait [#allocation4], 64  }
   0xc   :  { %102 = vsyncadd [#allocation4], 4294967232 }
   0xd   :  { %47 = vsyncpa [#allocation3], 1 }
   0xe   :  { %48 = vsyncpa [#allocation4], 1 }

</bundles_post_ra>
